<compile_context>
chip_gen: v5e
topology: v5e:2x2
jax: 0.10.0
libtpu: 0.0.40
codegen_flags: <defaults>
</compile_context>

<pallas_src>
import functools
import math

import jax
import jax.numpy as jnp
from jax import lax
from jax.experimental import pallas as pl
from jax.experimental.pallas import tpu as pltpu


_LANE = 128
_VMEM_LIMIT = 64 * 1024 * 1024  # conservative cap — fits v7x physical VMEM.


def _round_up(x, m):
    return ((x + m - 1) // m) * m


def _pick_tile(n, target):
    """Largest power-of-two tile <= target that divides n, else n (full dim)."""
    t = min(target, n)
    for cand in (512, 256, 128, 64, 32, 16, 8):
        if cand <= t and n % cand == 0:
            return cand
    return n


# ---------------------------------------------------------------------------
# Stage 1: linear projection  y = x @ W + b   (used for K and V only;
# the Q projection is fused into the attention kernel below).
# ---------------------------------------------------------------------------
def _linear_kernel(x_ref, w_ref, b_ref, o_ref):
    # Feed the MXU in the native input dtype; accumulate in f32.
    y = jnp.dot(x_ref[...], w_ref[...], preferred_element_type=jnp.float32)
    y = y + b_ref[...].astype(jnp.float32)
    o_ref[...] = y.astype(o_ref.dtype)


def _linear(x2d, w, b, *, row_tile=256):
    n_rows, d_in = x2d.shape
    d_out = w.shape[1]
    tr = _pick_tile(n_rows, row_tile)
    grid = (n_rows // tr,)
    return pl.pallas_call(
        _linear_kernel,
        out_shape=jax.ShapeDtypeStruct((n_rows, d_out), x2d.dtype),
        grid_spec=pltpu.PrefetchScalarGridSpec(
            num_scalar_prefetch=0,
            grid=grid,
            in_specs=[
                pl.BlockSpec((tr, d_in), lambda r: (r, 0)),
                # Weight / bias block index is constant -> stays VMEM-resident.
                pl.BlockSpec((d_in, d_out), lambda r: (0, 0)),
                pl.BlockSpec((1, d_out), lambda r: (0, 0)),
            ],
            out_specs=pl.BlockSpec((tr, d_out), lambda r: (r, 0)),
        ),
        compiler_params=pltpu.CompilerParams(
            dimension_semantics=("parallel",),
            vmem_limit_bytes=_VMEM_LIMIT),
    )(x2d, w, b)


# ---------------------------------------------------------------------------
# Stage 2: flash attention with fused Q projection + online softmax
#   grid = (B, Sq // tq, Skv // tk), last axis is the reduction.
# ---------------------------------------------------------------------------
def _flash_attn_kernel(q_ref, wq_ref, bq_ref, k_ref, v_ref, o_ref,
                       q_sc, m_sc, l_sc, acc_sc, *, scale):
    ki = pl.program_id(2)

    @pl.when(ki == 0)
    def _init():
        # Project this Q tile once per (batch, q-tile); reused for every KV
        # step.  Bias and the 1/sqrt(d_k) scale are folded here, O(tq*d_k)
        # instead of scaling the (tq, tk) score matrix each step.
        qw = jnp.dot(q_ref[0], wq_ref[...], preferred_element_type=jnp.float32)
        qw = (qw + bq_ref[...].astype(jnp.float32)) * scale
        q_sc[...] = qw.astype(q_sc.dtype)
        m_sc[...] = jnp.full(m_sc.shape, -jnp.inf, dtype=m_sc.dtype)
        l_sc[...] = jnp.zeros(l_sc.shape, dtype=l_sc.dtype)
        acc_sc[...] = jnp.zeros(acc_sc.shape, dtype=acc_sc.dtype)

    k = k_ref[0]                       # (tk, d_k_pad), native dtype
    # Contracting-dim dot: no explicit K^T is materialized (no XLU transpose).
    s = lax.dot_general(q_sc[...], k, (((1,), (1,)), ((), ())),
                        preferred_element_type=jnp.float32)    # (tq, tk) f32

    m_prev = m_sc[...]
    m_new = jnp.maximum(m_prev, jnp.max(s, axis=-1, keepdims=True))
    alpha = jnp.exp(m_prev - m_new)
    p = jnp.exp(s - m_new)
    l_sc[...] = alpha * l_sc[...] + jnp.sum(p, axis=-1, keepdims=True)
    acc_sc[...] = alpha * acc_sc[...] + jnp.dot(
        p.astype(v_ref.dtype), v_ref[0], preferred_element_type=jnp.float32)
    m_sc[...] = m_new

    @pl.when(ki == pl.num_programs(2) - 1)
    def _finalize():
        inv_l = pl.reciprocal(l_sc[...], approx=True)   # EUP slot, nearly free
        o_ref[0] = (acc_sc[...] * inv_l).astype(o_ref.dtype)


def dot_product_attention(Q, K, V, params, *, q_tile=256, kv_tile=256):
    """Q: (B, Sq, d_model), K/V: (B, Skv, d_model). Returns (B, Sq, d_v)."""
    B, Sq, d_model = Q.shape
    _, Skv, _ = K.shape
    wq, bq = params["wq"], params["bq"]
    wk, bk = params["wk"], params["bk"]
    wv, bv = params["wv"], params["bv"]
    d_q, d_k, d_v = wq.shape[1], wk.shape[1], wv.shape[1]
    assert d_q == d_k, "QW @ KW^T requires d_q == d_k"

    # Zero-pad projected feature dims to a lane multiple so all attention
    # loads/stores are unmasked (lane-dense); padding columns contribute 0
    # to the QK^T contraction and are sliced off the output.
    d_qk_p = _round_up(d_q, _LANE)
    d_v_p = _round_up(d_v, _LANE)
    wq_p = jnp.pad(wq, ((0, 0), (0, d_qk_p - d_q)))
    bq_p = jnp.pad(bq.reshape(1, d_q), ((0, 0), (0, d_qk_p - d_q)))
    wk_p = jnp.pad(wk, ((0, 0), (0, d_qk_p - d_k)))
    bk_p = jnp.pad(bk.reshape(1, d_k), ((0, 0), (0, d_qk_p - d_k)))
    wv_p = jnp.pad(wv, ((0, 0), (0, d_v_p - d_v)))
    bv_p = jnp.pad(bv.reshape(1, d_v), ((0, 0), (0, d_v_p - d_v)))

    scale = 1.0 / math.sqrt(d_k)

    # Hoisted K/V projections: computed once, not per Q tile.
    kw = _linear(K.reshape(B * Skv, d_model), wk_p, bk_p).reshape(B, Skv, d_qk_p)
    vw = _linear(V.reshape(B * Skv, d_model), wv_p, bv_p).reshape(B, Skv, d_v_p)

    tq = _pick_tile(Sq, q_tile)
    tk = _pick_tile(Skv, kv_tile)
    grid = (B, Sq // tq, Skv // tk)

    out = pl.pallas_call(
        functools.partial(_flash_attn_kernel, scale=scale),
        out_shape=jax.ShapeDtypeStruct((B, Sq, d_v_p), Q.dtype),
        grid_spec=pltpu.PrefetchScalarGridSpec(
            num_scalar_prefetch=0,
            grid=grid,
            in_specs=[
                # Raw Q rows (projected in-kernel at the first KV step).
                pl.BlockSpec((1, tq, d_model), lambda b, qi, ki: (b, qi, 0)),
                # Q weight / bias: constant block index -> VMEM-resident.
                pl.BlockSpec((d_model, d_qk_p), lambda b, qi, ki: (0, 0)),
                pl.BlockSpec((1, d_qk_p), lambda b, qi, ki: (0, 0)),
                pl.BlockSpec((1, tk, d_qk_p), lambda b, qi, ki: (b, ki, 0)),
                pl.BlockSpec((1, tk, d_v_p), lambda b, qi, ki: (b, ki, 0)),
            ],
            out_specs=pl.BlockSpec((1, tq, d_v_p), lambda b, qi, ki: (b, qi, 0)),
            scratch_shapes=[
                pltpu.VMEM((tq, d_qk_p), Q.dtype),     # projected+scaled Q tile
                pltpu.VMEM((tq, 1), jnp.float32),      # running max m
                pltpu.VMEM((tq, 1), jnp.float32),      # running denom l
                pltpu.VMEM((tq, d_v_p), jnp.float32),  # output accumulator
            ]),
        compiler_params=pltpu.CompilerParams(
            dimension_semantics=("parallel", "parallel", "arbitrary"),
            vmem_limit_bytes=_VMEM_LIMIT),
    )(Q, wq_p, bq_p, kw, vw)

    return out[:, :, :d_v]


# ---------------------------------------------------------------------------
# Pure-JAX reference & init
# ---------------------------------------------------------------------------
def _reference(Q, K, V, params):
    qw = Q @ params["wq"] + params["bq"]
    kw = K @ params["wk"] + params["bk"]
    vw = V @ params["wv"] + params["bv"]
    scores = jnp.einsum("bqd,bkd->bqk", qw, kw) / math.sqrt(kw.shape[-1])
    attn = jax.nn.softmax(scores, axis=-1)
    return jnp.einsum("bqk,bkd->bqd", attn, vw)


def init_params(key, d_model, d_q, d_k, d_v, dtype=jnp.float32):
    ks = jax.random.split(key, 6)

    # Deterministic, PyTorch-Linear-like uniform init.
    def lin(kw, kb, fan_in, fan_out):
        bound = 1.0 / math.sqrt(fan_in)
        w = jax.random.uniform(kw, (fan_in, fan_out), dtype, -bound, bound)
        b = jax.random.uniform(kb, (fan_out,), dtype, -bound, bound)
        return w, b

    wq, bq = lin(ks[0], ks[1], d_model, d_q)
    wk, bk = lin(ks[2], ks[3], d_model, d_k)
    wv, bv = lin(ks[4], ks[5], d_model, d_v)
    return {"wq": wq, "bq": bq, "wk": wk, "bk": bk, "wv": wv, "bv": bv}


if __name__ == "__main__":
    key = jax.random.PRNGKey(0)
    k_params, k_q, k_k, k_v = jax.random.split(key, 4)

    B, S = 2, 16
    d_model, d_q, d_k, d_v = 32, 16, 16, 16

    params = init_params(k_params, d_model, d_q, d_k, d_v)
    Q = jax.random.normal(k_q, (B, S, d_model), dtype=jnp.float32)
    K = jax.random.normal(k_k, (B, S, d_model), dtype=jnp.float32)
    V = jax.random.normal(k_v, (B, S, d_model), dtype=jnp.float32)

    # Small tiles so the (B, q-tile, kv-tile) grid, the fused per-q-tile Q
    # projection, and the online-softmax accumulation across multiple KV
    # steps are actually exercised.
    out = dot_product_attention(Q, K, V, params, q_tile=8, kv_tile=8)
    out = jax.block_until_ready(out)

    ref = _reference(Q, K, V, params)
    assert out.shape == (B, S, d_v)
    # Slightly widened tolerance: approx (EUP) reciprocal in the final
    # softmax normalization.
    assert jnp.allclose(out, ref, atol=2e-3, rtol=2e-3), "mismatch vs reference"

    print("KERNEL_OK")
</pallas_src>

<mosaic_0001>
module attributes {stable_mosaic.version = 11 : i64} {
  func.func @_linear_kernel(%arg0: i32, %arg1: memref<32x32xf32, #tpu.memory_space<vmem>>, %arg2: memref<32x128xf32, #tpu.memory_space<vmem>>, %arg3: memref<1x128xf32, #tpu.memory_space<vmem>>, %arg4: memref<32x128xf32, #tpu.memory_space<vmem>>) attributes {dimension_semantics = [#tpu.dimension_semantics<parallel>], iteration_bounds = array<i64: 1>, scalar_prefetch = 0 : i64, scratch_operands = 0 : i64, tpu.core_type = #tpu.core_type<tc>, window_params = [{transform_indices = @transform_0, window_bounds = array<i64: 32, 32>}, {pipeline_mode = #tpu.pipeline_mode<synchronous>, transform_indices = @transform_1, window_bounds = array<i64: 32, 128>}, {pipeline_mode = #tpu.pipeline_mode<synchronous>, transform_indices = @transform_2, window_bounds = array<i64: 1, 128>}, {transform_indices = @transform_3, window_bounds = array<i64: 32, 128>}]} {
    %c0 = arith.constant 0 : index
    %c0_0 = arith.constant 0 : index
    %0 = vector.load %arg1[%c0, %c0_0] : memref<32x32xf32, #tpu.memory_space<vmem>>, vector<32x32xf32>
    %c0_1 = arith.constant 0 : index
    %c0_2 = arith.constant 0 : index
    %1 = vector.load %arg2[%c0_1, %c0_2] : memref<32x128xf32, #tpu.memory_space<vmem>>, vector<32x128xf32>
    %cst = arith.constant dense<0.000000e+00> : vector<32x128xf32>
    %2 = tpu.matmul %0, %1, %cst {dimension_numbers = #tpu.dot_dimension_numbers<[1], [0], [0], [1], [0, 0, 1, 1], [], []>} : vector<32x32xf32>, vector<32x128xf32>, vector<32x128xf32> -> vector<32x128xf32>
    %c0_3 = arith.constant 0 : index
    %c0_4 = arith.constant 0 : index
    %3 = vector.load %arg3[%c0_3, %c0_4] : memref<1x128xf32, #tpu.memory_space<vmem>>, vector<1x128xf32>
    %4 = vector.broadcast %3 : vector<1x128xf32> to vector<32x128xf32>
    %5 = arith.addf %2, %4 : vector<32x128xf32>
    %c0_5 = arith.constant 0 : index
    %c0_6 = arith.constant 0 : index
    %6 = vector.load %arg4[%c0_5, %c0_6] : memref<32x128xf32, #tpu.memory_space<vmem>>, vector<32x128xf32>
    tpu.vector_store %arg4[%c0_5, %c0_6], %5 {strides = array<i32>} : memref<32x128xf32, #tpu.memory_space<vmem>>, vector<32x128xf32>,
    return
  }
  func.func @transform_0(%arg0: i32) -> (i32, i32) {
    %c0_i32 = arith.constant 0 : i32
    %c0_i32_0 = arith.constant 0 : i32
    return %arg0, %c0_i32 : i32, i32
  }
  func.func @transform_1(%arg0: i32) -> (i32, i32) {
    %c0_i32 = arith.constant 0 : i32
    %c0_i32_0 = arith.constant 0 : i32
    %c0_i32_1 = arith.constant 0 : i32
    return %c0_i32, %c0_i32_0 : i32, i32
  }
  func.func @transform_2(%arg0: i32) -> (i32, i32) {
    %c0_i32 = arith.constant 0 : i32
    %c0_i32_0 = arith.constant 0 : i32
    %c0_i32_1 = arith.constant 0 : i32
    return %c0_i32, %c0_i32_0 : i32, i32
  }
  func.func @transform_3(%arg0: i32) -> (i32, i32) {
    %c0_i32 = arith.constant 0 : i32
    %c0_i32_0 = arith.constant 0 : i32
    return %arg0, %c0_i32 : i32, i32
  }
}

</mosaic_0001>

<bundles_post_ra>
// kernel: tpu_custom_call.1
= control target key start
LH: loop header
LB: loop body
LE: loop exit
PB: predicated region body
PF: predicated region fallthrough
CT: control target
= control target key end

     0   :  { %8 = vsyncpa [#allocation3], 0  ;;  %s271_s0 = inlined_call_operand.hbm [shape: f32[32,32], index: 0, kind: input, shape index: {}]   ;;  %s272_s1 = inlined_call_operand.hbm [shape: f32[32,128], index: 1, kind: input, shape index: {}]   ;;  %s273_s2 = inlined_call_operand.vmem [shape: f32[1,128], index: 2, kind: input, shape index: {}]   ;;  %s274_s3 = inlined_call_operand.hbm [shape: f32[32,128], index: 3, kind: output, shape index: {}]  }
   0x1   :  { %9 = vsyncpa [#allocation6], 0 }
   0x2   :  { %10 = vsyncpa [#allocation4], 0  ;;  %s15_s14 = sshll.u32 %s271_s0, 4  ;;  %s225_s15 = smov [#allocation2]   ;;  %s16_s14 = int_to_ptr.hbm [resolvable:$true] %s15_s14 }
   0x3   :  { %s17_s16 = sshll.u32 %s225_s15, 4  ;;  %s28_s19 = sshll.u32 %s272_s1, 4  ;;  %s18_s16 = int_to_ptr.vmem [resolvable:$true] %s17_s16  ;;  %s29_s19 = int_to_ptr.hbm [resolvable:$true] %s28_s19 }
   0x4   :  { %s226_s20 = smov 128   ;;  %s227_s21 = smov 8  }
   0x5   :  { %23 = dma.hbm_to_vmem [thread:$0]  %s16_s14, 512, %s18_s16, [#allocation3], %s226_s20, %s226_s20, %s227_s21  }
   0x6   :  { %s228_s22 = smov [#allocation5]  }
   0x7   :  { %s30_s23 = sshll.u32 %s228_s22, 4  ;;  %s31_s23 = int_to_ptr.vmem [resolvable:$true] %s30_s23 }
   0x8   :  { %36 = dma.hbm_to_vmem [thread:$0]  %s29_s19, 512, %s31_s23, [#allocation6], %s226_s20, %s226_s20, %s227_s21  }
   0x9   :  { %219 = dma.done.wait [#allocation3], 512  }
   0xa   :  { %220 = vsyncadd [#allocation3], 4294966784 }
   0xb   :  { %221 = dma.done.wait [#allocation6], 512  }
   0xc   :  { %222 = vsyncadd [#allocation6], 4294966784  ;;  %v54_v0 = vld [vmem:[#allocation5 + $0x18] sm:$0xff]  ;;  %v53_v1 = vld [vmem:[#allocation5 + $0x10] sm:$0xff]  ;;  %vm59_vm0 = vcmask 261120   ;;  %s229_s24 = smov [#allocation7]  }
   0xd   :  { %130 = vmatpush.msra.mxu2 %v54_v0  ;;  %131 = vmatpush.msra.mxu3 %v54_v0  ;;  %v52_v2 = vld [vmem:[#allocation5 + $0x8] sm:$0xff]  ;;  %v51_v3 = vld [vmem:[#allocation5] sm:$0xff]  ;;  %v49_v4 = vld [vmem:[#allocation2 + $0x10] sm:$0xff]  ;;  %s109_s25 = sshll.u32 %s229_s24, 4  ;;  %s111_s28 = sshll.u32 %s274_s3, 4  ;;  %s110_s25 = int_to_ptr.vmem [resolvable:$true] %s109_s25  ;;  %s112_s28 = int_to_ptr.hbm [resolvable:$true] %s111_s28 }
   0xe   :  { %84 = vmatpush.msra.mxu0 %v54_v0  ;;  %129 = vmatpush.msra.mxu1 %v54_v0  ;;  %v50_v5 = vld [vmem:[#allocation2 + $0x18] sm:$0xff]  ;;  %v47_v6 = vld [vmem:[#allocation2] sm:$0xff]  ;;  %v48_v7 = vld [vmem:[#allocation2 + $0x8] sm:$0xff] }
   0xf   :  { %133 = vmatpush.msra.mxu2 %v53_v1  ;;  %134 = vmatpush.msra.mxu3 %v53_v1  ;;  %v146_v8 = vld [vmem:[%s273_s2] ss:$0 sm:$0xff] }
  0x10   :  { %85 = vmatpush.msra.mxu0 %v53_v1  ;;  %132 = vmatpush.msra.mxu1 %v53_v1 }
  0x11   :  { %136 = vmatpush.msra.mxu2 %v52_v2  ;;  %137 = vmatpush.msra.mxu3 %v52_v2 }
  0x12   :  { %86 = vmatpush.msra.mxu0 %v52_v2  ;;  %135 = vmatpush.msra.mxu1 %v52_v2 }
  0x13   :  { %139 = vmatpush.msra.mxu2 %v51_v3  ;;  %140 = vmatpush.msra.mxu3 %v51_v3 }
  0x14   :  { %127 = vmatmul.msk.f32.vlgmr.msra.gmra.mxu2 %vm59_vm0, %v49_v4  ;;  %128 = vmatmul.msk.f32.vlgmr.msra.gmra.mxu3 %vm59_vm0, %v50_v5 }
  0x15   :  { %87 = vmatpush.msra.mxu0 %v51_v3  ;;  %138 = vmatpush.msra.mxu1 %v51_v3 }
  0x16   :  { %125 = vmatmul.msk.f32.vlgmr.msra.gmra.mxu0 %vm59_vm0, %v47_v6  ;;  %126 = vmatmul.msk.f32.vlgmr.msra.gmra.mxu1 %vm59_vm0, %v48_v7 }
  0x93   :  { %v89_v9 = vpop.f32.mrf.mxu0  ;;  %v92_v10 = vpop.f32.mrf.mxu1 }
  0x94   :  { %v90_v11 = vadd.f32 %v146_v8, %v89_v9  ;;  %v93_v12 = vadd.f32 %v146_v8, %v92_v10 }
  0x96   :  { %101 = vst [vmem:[#allocation7] sm:$0xff] %v90_v11 }
  0x97   :  { %102 = vst [vmem:[#allocation7 + $0x8] sm:$0xff] %v93_v12  ;;  %v95_v13 = vpop.f32.mrf.mxu2  ;;  %v98_v14 = vpop.f32.mrf.mxu3 }
  0x98   :  { %v96_v15 = vadd.f32 %v146_v8, %v95_v13  ;;  %v99_v16 = vadd.f32 %v146_v8, %v98_v14 }
  0x9a   :  { %103 = vst [vmem:[#allocation7 + $0x10] sm:$0xff] %v96_v15 }
  0x9b   :  { %104 = vst [vmem:[#allocation7 + $0x18] sm:$0xff] %v99_v16 }
  0x9c   :  { %117 = dma.vmem_to_hbm [thread:$0]  %s110_s25, 512, %s112_s28, [#allocation4], %s226_s20, %s226_s20, %s227_s21  }
  0x9d   :  { %223 = dma.done.wait [#allocation4], 512  }
  0x9e   :  { %224 = vsyncadd [#allocation4], 4294966784 }
  0x9f   :  { %122 = vsyncpa [#allocation3], 1 }
  0xa0   :  { %123 = vsyncpa [#allocation6], 1 }
  0xa1   :  { %124 = vsyncpa [#allocation4], 1 }

</bundles_post_ra>
